<compile_context>
chip_gen: v7x
topology: tpu7x:2x2x1
jax: 0.10.0
libtpu: 0.0.40
codegen_flags: <defaults>
</compile_context>

<pallas_src>
import jax
import jax.numpy as jnp
from jax.experimental import pallas as pl
from jax.experimental.pallas import tpu as pltpu


_LANES = 128
_DEFAULT_TILE_ROWS = 2048     # 2048 rows x 128 lanes = 256K elements per param per step
_SMALL_N_FALLBACK = 4096      # below this, XLA's fused elementwise beats a kernel launch

_OFFSETS = (0.0, 0.0, 10.0)
_INV_SCALES = (1.0 / 199.0, 1.0 / 199.0, 1.0 / 39.0)


def _smooth_l1(pred_f32, tgt_f32):
    d = pred_f32 - tgt_f32
    ad = jnp.abs(d)
    return jnp.where(ad < 1.0, 0.5 * d * d, ad - 0.5)


def _make_kernel(rows, tile_rows, num_tiles):
    has_partial = (num_tiles * tile_rows) != rows   # static: only then mask the last tile

    def kernel(pred_ref, gtr_ref, gtc_ref, gta_ref,
               o_row_ref, o_col_ref, o_rad_ref,
               acc_row, acc_col, acc_rad):
        i = pl.program_id(0)

        @pl.when(i == 0)
        def _init():
            acc_row[...] = jnp.zeros_like(acc_row)
            acc_col[...] = jnp.zeros_like(acc_col)
            acc_rad[...] = jnp.zeros_like(acc_rad)

        def per(p_slice, g_ref, off, inv_s):
            tgt = (g_ref[...].astype(jnp.float32) - off) * inv_s
            return _smooth_l1(p_slice.astype(jnp.float32), tgt)

        # Three dense (tile_rows, 128) streams; no concatenated (3, n) target.
        per_row = per(pred_ref[0], gtr_ref, _OFFSETS[0], _INV_SCALES[0])
        per_col = per(pred_ref[1], gtc_ref, _OFFSETS[1], _INV_SCALES[1])
        per_rad = per(pred_ref[2], gta_ref, _OFFSETS[2], _INV_SCALES[2])

        if has_partial:
            last = num_tiles - 1

            @pl.when(i != last)
            def _acc_full():
                acc_row[...] += per_row
                acc_col[...] += per_col
                acc_rad[...] += per_rad

            @pl.when(i == last)
            def _acc_masked():
                # Only the final (partial) block carries stale rows; mask them here.
                ridx = jax.lax.broadcasted_iota(jnp.int32, (tile_rows, _LANES), 0)
                valid = (last * tile_rows + ridx) < rows
                acc_row[...] += jnp.where(valid, per_row, 0.0)
                acc_col[...] += jnp.where(valid, per_col, 0.0)
                acc_rad[...] += jnp.where(valid, per_rad, 0.0)
        else:
            acc_row[...] += per_row
            acc_col[...] += per_col
            acc_rad[...] += per_rad

        @pl.when(i == num_tiles - 1)
        def _finalize():
            # Single cross-sublane reduction, once; cross-lane sum + 1/N happen
            # in the (tiny) JAX epilogue on a (1, 128) partial per parameter.
            o_row_ref[...] = jnp.sum(acc_row[...], axis=0, keepdims=True)
            o_col_ref[...] = jnp.sum(acc_col[...], axis=0, keepdims=True)
            o_rad_ref[...] = jnp.sum(acc_rad[...], axis=0, keepdims=True)

    return kernel


def _loss_jnp(pred_cols, gts):
    """Fused jnp fallback for tiny batches. pred_cols/gts: three (N,) arrays each."""
    def mean_sl1(p, g, off, inv_s):
        t = (g.astype(jnp.float32) - off) * inv_s
        return jnp.mean(_smooth_l1(p.astype(jnp.float32), t))

    row = mean_sl1(pred_cols[0], gts[0], _OFFSETS[0], _INV_SCALES[0])
    col = mean_sl1(pred_cols[1], gts[1], _OFFSETS[1], _INV_SCALES[1])
    rad = mean_sl1(pred_cols[2], gts[2], _OFFSETS[2], _INV_SCALES[2])
    return {"row_reg_loss": row, "col_reg_loss": col,
            "rad_reg_loss": rad, "loss": row + col + rad}


def regression_loss(out_params, gt_params, *, tile_rows=_DEFAULT_TILE_ROWS,
                    params_major=False, small_n_fallback=_SMALL_N_FALLBACK):
    """SmoothL1 regression loss (matches RegressionLoss.forward).

    out_params: (N, 3) predictions (PyTorch layout), or (3, N) if params_major=True
        (preferred upstream layout: avoids one extra HBM pass for the transpose).
    gt_params:  sequence of three (N,) raw targets [row, col, rad].
    """
    pred = jnp.asarray(out_params)
    if not jnp.issubdtype(pred.dtype, jnp.floating):
        pred = pred.astype(jnp.float32)

    gts = []
    for g in gt_params:
        g = jnp.asarray(g).reshape(-1)
        if not jnp.issubdtype(g.dtype, jnp.floating):
            g = g.astype(jnp.float32)   # matches gt.to(torch.float) for integer inputs
        gts.append(g)

    if params_major:
        assert pred.shape[0] == 3
        n = pred.shape[1]
    else:
        assert pred.shape[1] == 3
        n = pred.shape[0]

    if n < small_n_fallback:
        cols = ((pred[0], pred[1], pred[2]) if params_major
                else (pred[:, 0], pred[:, 1], pred[:, 2]))
        return _loss_jnp(cols, gts)

    # ---- sublane/lane-dense layout: (3, rows, 128) pred, (rows, 128) gts ----
    rows = pl.cdiv(n, _LANES)
    n_pad = rows * _LANES
    pad = n_pad - n

    if params_major:
        p3 = jnp.pad(pred, ((0, 0), (0, pad))) if pad else pred
        p3 = p3.reshape(3, rows, _LANES)
    else:
        # One extra HBM pass for the (N,3)->(3,N) transpose (fused with the pad);
        # pass params_major=True with a (3, N) array upstream to avoid it.
        p = jnp.pad(pred, ((0, pad), (0, 0))) if pad else pred
        p3 = p.T.reshape(3, rows, _LANES)

    gts2 = []
    for g, off in zip(gts, _OFFSETS):
        if pad:
            # Neutral padding: target becomes (off - off) * scale = 0 and the pred
            # pad is 0, so padded lanes contribute exactly 0 -- no lane masking.
            g = jnp.pad(g, (0, pad), constant_values=off)
        gts2.append(g.reshape(rows, _LANES))

    eff_rows = rows if rows <= tile_rows else max(8, (int(tile_rows) // 8) * 8)
    num_tiles = pl.cdiv(rows, eff_rows)

    out_shape = tuple(jax.ShapeDtypeStruct((1, _LANES), jnp.float32) for _ in range(3))

    partials = pl.pallas_call(
        _make_kernel(rows, eff_rows, num_tiles),
        out_shape=out_shape,
        grid_spec=pltpu.PrefetchScalarGridSpec(
            num_scalar_prefetch=0,
            grid=(num_tiles,),
            in_specs=[
                pl.BlockSpec((3, eff_rows, _LANES), lambda i: (0, i, 0)),   # pred
                pl.BlockSpec((eff_rows, _LANES), lambda i: (i, 0)),         # gt row
                pl.BlockSpec((eff_rows, _LANES), lambda i: (i, 0)),         # gt col
                pl.BlockSpec((eff_rows, _LANES), lambda i: (i, 0)),         # gt rad
            ],
            out_specs=[
                pl.BlockSpec((1, _LANES), lambda i: (0, 0)),
                pl.BlockSpec((1, _LANES), lambda i: (0, 0)),
                pl.BlockSpec((1, _LANES), lambda i: (0, 0)),
            ],
            scratch_shapes=[
                pltpu.VMEM((eff_rows, _LANES), jnp.float32),
                pltpu.VMEM((eff_rows, _LANES), jnp.float32),
                pltpu.VMEM((eff_rows, _LANES), jnp.float32),
            ],
        ),
        compiler_params=pltpu.CompilerParams(
            dimension_semantics=("arbitrary",),
            vmem_limit_bytes=32 * 1024 * 1024,   # ~15 MiB actually used at default tile
        ),
    )(p3, gts2[0], gts2[1], gts2[2])

    row = jnp.sum(partials[0]) / n
    col = jnp.sum(partials[1]) / n
    rad = jnp.sum(partials[2]) / n
    return {"row_reg_loss": row, "col_reg_loss": col,
            "rad_reg_loss": rad, "loss": row + col + rad}


def _reference(out_params, gt_params):
    op = jnp.asarray(out_params, jnp.float32)
    g = [jnp.asarray(x, jnp.float32) for x in gt_params]

    def sl1_mean(pred, tgt):
        d = pred - tgt
        ad = jnp.abs(d)
        return jnp.mean(jnp.where(ad < 1.0, 0.5 * d * d, ad - 0.5))

    row = sl1_mean(op[:, 0], g[0] / 199.0)
    col = sl1_mean(op[:, 1], g[1] / 199.0)
    rad = sl1_mean(op[:, 2], (g[2] - 10.0) / 39.0)
    return {"row_reg_loss": row, "col_reg_loss": col,
            "rad_reg_loss": rad, "loss": row + col + rad}


if __name__ == "__main__":
    key = jax.random.PRNGKey(0)
    k1, k2, k3, k4 = jax.random.split(key, 4)

    # Small batch, deliberately NOT a multiple of 128: exercises the neutral lane
    # padding, multi-tile accumulation and the masked partial final row-tile.
    N = 2620
    out_params = jax.random.uniform(k1, (N, 3), dtype=jnp.float32)
    gt_row = jax.random.uniform(k2, (N,), minval=0.0, maxval=199.0, dtype=jnp.float32)
    gt_col = jax.random.uniform(k3, (N,), minval=0.0, maxval=199.0, dtype=jnp.float32)
    gt_rad = jax.random.uniform(k4, (N,), minval=10.0, maxval=49.0, dtype=jnp.float32)
    gt_params = [gt_row, gt_col, gt_rad]

    ref = _reference(out_params, gt_params)
    names = ("row_reg_loss", "col_reg_loss", "rad_reg_loss", "loss")

    # 1) Multi-tile path: rows=21, tile_rows=8 -> 3 tiles, last one partial (masked).
    out_multi = regression_loss(out_params, gt_params, tile_rows=8, small_n_fallback=0)
    out_multi = jax.tree_util.tree_map(jax.block_until_ready, out_multi)
    for nm in names:
        assert jnp.allclose(out_multi[nm], ref[nm], atol=1e-5, rtol=1e-5), \
            (nm, out_multi[nm], ref[nm])

    # 2) Default path: one full-extent tile, unmasked accumulation.
    out_single = regression_loss(out_params, gt_params, small_n_fallback=0)
    out_single = jax.tree_util.tree_map(jax.block_until_ready, out_single)
    for nm in names:
        assert jnp.allclose(out_single[nm], ref[nm], atol=1e-5, rtol=1e-5), \
            (nm, out_single[nm], ref[nm])

    # 3) Tiny-N fast path (pure fused jnp, no pallas_call).
    out_tiny = regression_loss(out_params[:8], [g[:8] for g in gt_params])
    out_tiny = jax.tree_util.tree_map(jax.block_until_ready, out_tiny)
    ref_tiny = _reference(out_params[:8], [g[:8] for g in gt_params])
    for nm in names:
        assert jnp.allclose(out_tiny[nm], ref_tiny[nm], atol=1e-5, rtol=1e-5), \
            (nm, out_tiny[nm], ref_tiny[nm])

    print("KERNEL_OK")
</pallas_src>

<mosaic_0001>
module attributes {stable_mosaic.version = 11 : i64} {
  func.func @kernel(%arg0: i32, %arg1: memref<3x8x128xf32, #tpu.memory_space<vmem>>, %arg2: memref<8x128xf32, #tpu.memory_space<vmem>>, %arg3: memref<8x128xf32, #tpu.memory_space<vmem>>, %arg4: memref<8x128xf32, #tpu.memory_space<vmem>>, %arg5: memref<1x128xf32, #tpu.memory_space<vmem>>, %arg6: memref<1x128xf32, #tpu.memory_space<vmem>>, %arg7: memref<1x128xf32, #tpu.memory_space<vmem>>, %arg8: memref<8x128xf32, #tpu.memory_space<vmem>>, %arg9: memref<8x128xf32, #tpu.memory_space<vmem>>, %arg10: memref<8x128xf32, #tpu.memory_space<vmem>>) attributes {dimension_semantics = [#tpu.dimension_semantics<arbitrary>], iteration_bounds = array<i64: 3>, scalar_prefetch = 0 : i64, scratch_operands = 3 : i64, tpu.core_type = #tpu.core_type<tc>, window_params = [{transform_indices = @transform_0, window_bounds = array<i64: 3, 8, 128>}, {transform_indices = @transform_1, window_bounds = array<i64: 8, 128>}, {transform_indices = @transform_2, window_bounds = array<i64: 8, 128>}, {transform_indices = @transform_3, window_bounds = array<i64: 8, 128>}, {pipeline_mode = #tpu.pipeline_mode<synchronous>, transform_indices = @transform_4, window_bounds = array<i64: 1, 128>}, {pipeline_mode = #tpu.pipeline_mode<synchronous>, transform_indices = @transform_5, window_bounds = array<i64: 1, 128>}, {pipeline_mode = #tpu.pipeline_mode<synchronous>, transform_indices = @transform_6, window_bounds = array<i64: 1, 128>}]} {
    %c0_i32 = arith.constant 0 : i32
    %0 = arith.cmpi eq, %arg0, %c0_i32 : i32
    %1 = arith.extui %0 : i1 to i32
    %c0_i32_0 = arith.constant 0 : i32
    %2 = arith.cmpi ne, %1, %c0_i32_0 : i32
    scf.if %2 {
      %cst_32 = arith.constant 0.000000e+00 : f32
      %63 = vector.broadcast %cst_32 : f32 to vector<8x128xf32>
      %c0_33 = arith.constant 0 : index
      %c0_34 = arith.constant 0 : index
      %64 = vector.load %arg8[%c0_33, %c0_34] : memref<8x128xf32, #tpu.memory_space<vmem>>, vector<8x128xf32>
      tpu.vector_store %arg8[%c0_33, %c0_34], %63 {strides = array<i32>} : memref<8x128xf32, #tpu.memory_space<vmem>>, vector<8x128xf32>,
      %cst_35 = arith.constant 0.000000e+00 : f32
      %65 = vector.broadcast %cst_35 : f32 to vector<8x128xf32>
      %c0_36 = arith.constant 0 : index
      %c0_37 = arith.constant 0 : index
      %66 = vector.load %arg9[%c0_36, %c0_37] : memref<8x128xf32, #tpu.memory_space<vmem>>, vector<8x128xf32>
      tpu.vector_store %arg9[%c0_36, %c0_37], %65 {strides = array<i32>} : memref<8x128xf32, #tpu.memory_space<vmem>>, vector<8x128xf32>,
      %cst_38 = arith.constant 0.000000e+00 : f32
      %67 = vector.broadcast %cst_38 : f32 to vector<8x128xf32>
      %c0_39 = arith.constant 0 : index
      %c0_40 = arith.constant 0 : index
      %68 = vector.load %arg10[%c0_39, %c0_40] : memref<8x128xf32, #tpu.memory_space<vmem>>, vector<8x128xf32>
      tpu.vector_store %arg10[%c0_39, %c0_40], %67 {strides = array<i32>} : memref<8x128xf32, #tpu.memory_space<vmem>>, vector<8x128xf32>,
    } else {
    }
    %c0 = arith.constant 0 : index
    %c0_1 = arith.constant 0 : index
    %c0_2 = arith.constant 0 : index
    %3 = vector.load %arg1[%c0, %c0_1, %c0_2] : memref<3x8x128xf32, #tpu.memory_space<vmem>>, vector<1x8x128xf32>
    %4 = vector.shape_cast %3 : vector<1x8x128xf32> to vector<8x128xf32>
    %c0_3 = arith.constant 0 : index
    %c0_4 = arith.constant 0 : index
    %5 = vector.load %arg2[%c0_3, %c0_4] : memref<8x128xf32, #tpu.memory_space<vmem>>, vector<8x128xf32>
    %cst = arith.constant 0.000000e+00 : f32
    %6 = vector.broadcast %cst : f32 to vector<8x128xf32>
    %7 = arith.subf %5, %6 : vector<8x128xf32>
    %cst_5 = arith.constant 0.00502512557 : f32
    %8 = vector.broadcast %cst_5 : f32 to vector<8x128xf32>
    %9 = arith.mulf %7, %8 : vector<8x128xf32>
    %10 = arith.subf %4, %9 : vector<8x128xf32>
    %11 = math.absf %10 : vector<8x128xf32>
    %cst_6 = arith.constant 1.000000e+00 : f32
    %12 = vector.broadcast %cst_6 : f32 to vector<8x128xf32>
    %13 = arith.cmpf olt, %11, %12 : vector<8x128xf32>
    %cst_7 = arith.constant 5.000000e-01 : f32
    %14 = vector.broadcast %cst_7 : f32 to vector<8x128xf32>
    %15 = arith.mulf %14, %10 : vector<8x128xf32>
    %16 = arith.mulf %15, %10 : vector<8x128xf32>
    %cst_8 = arith.constant 5.000000e-01 : f32
    %17 = vector.broadcast %cst_8 : f32 to vector<8x128xf32>
    %18 = arith.subf %11, %17 : vector<8x128xf32>
    %19 = arith.select %13, %16, %18 : vector<8x128xi1>, vector<8x128xf32>
    %c1 = arith.constant 1 : index
    %c0_9 = arith.constant 0 : index
    %c0_10 = arith.constant 0 : index
    %20 = vector.load %arg1[%c1, %c0_9, %c0_10] : memref<3x8x128xf32, #tpu.memory_space<vmem>>, vector<1x8x128xf32>
    %21 = vector.shape_cast %20 : vector<1x8x128xf32> to vector<8x128xf32>
    %c0_11 = arith.constant 0 : index
    %c0_12 = arith.constant 0 : index
    %22 = vector.load %arg3[%c0_11, %c0_12] : memref<8x128xf32, #tpu.memory_space<vmem>>, vector<8x128xf32>
    %cst_13 = arith.constant 0.000000e+00 : f32
    %23 = vector.broadcast %cst_13 : f32 to vector<8x128xf32>
    %24 = arith.subf %22, %23 : vector<8x128xf32>
    %cst_14 = arith.constant 0.00502512557 : f32
    %25 = vector.broadcast %cst_14 : f32 to vector<8x128xf32>
    %26 = arith.mulf %24, %25 : vector<8x128xf32>
    %27 = arith.subf %21, %26 : vector<8x128xf32>
    %28 = math.absf %27 : vector<8x128xf32>
    %cst_15 = arith.constant 1.000000e+00 : f32
    %29 = vector.broadcast %cst_15 : f32 to vector<8x128xf32>
    %30 = arith.cmpf olt, %28, %29 : vector<8x128xf32>
    %cst_16 = arith.constant 5.000000e-01 : f32
    %31 = vector.broadcast %cst_16 : f32 to vector<8x128xf32>
    %32 = arith.mulf %31, %27 : vector<8x128xf32>
    %33 = arith.mulf %32, %27 : vector<8x128xf32>
    %cst_17 = arith.constant 5.000000e-01 : f32
    %34 = vector.broadcast %cst_17 : f32 to vector<8x128xf32>
    %35 = arith.subf %28, %34 : vector<8x128xf32>
    %36 = arith.select %30, %33, %35 : vector<8x128xi1>, vector<8x128xf32>
    %c2 = arith.constant 2 : index
    %c0_18 = arith.constant 0 : index
    %c0_19 = arith.constant 0 : index
    %37 = vector.load %arg1[%c2, %c0_18, %c0_19] : memref<3x8x128xf32, #tpu.memory_space<vmem>>, vector<1x8x128xf32>
    %38 = vector.shape_cast %37 : vector<1x8x128xf32> to vector<8x128xf32>
    %c0_20 = arith.constant 0 : index
    %c0_21 = arith.constant 0 : index
    %39 = vector.load %arg4[%c0_20, %c0_21] : memref<8x128xf32, #tpu.memory_space<vmem>>, vector<8x128xf32>
    %cst_22 = arith.constant 1.000000e+01 : f32
    %40 = vector.broadcast %cst_22 : f32 to vector<8x128xf32>
    %41 = arith.subf %39, %40 : vector<8x128xf32>
    %cst_23 = arith.constant 0.025641026 : f32
    %42 = vector.broadcast %cst_23 : f32 to vector<8x128xf32>
    %43 = arith.mulf %41, %42 : vector<8x128xf32>
    %44 = arith.subf %38, %43 : vector<8x128xf32>
    %45 = math.absf %44 : vector<8x128xf32>
    %cst_24 = arith.constant 1.000000e+00 : f32
    %46 = vector.broadcast %cst_24 : f32 to vector<8x128xf32>
    %47 = arith.cmpf olt, %45, %46 : vector<8x128xf32>
    %cst_25 = arith.constant 5.000000e-01 : f32
    %48 = vector.broadcast %cst_25 : f32 to vector<8x128xf32>
    %49 = arith.mulf %48, %44 : vector<8x128xf32>
    %50 = arith.mulf %49, %44 : vector<8x128xf32>
    %cst_26 = arith.constant 5.000000e-01 : f32
    %51 = vector.broadcast %cst_26 : f32 to vector<8x128xf32>
    %52 = arith.subf %45, %51 : vector<8x128xf32>
    %53 = arith.select %47, %50, %52 : vector<8x128xi1>, vector<8x128xf32>
    %c2_i32 = arith.constant 2 : i32
    %54 = arith.cmpi ne, %arg0, %c2_i32 : i32
    %55 = arith.extui %54 : i1 to i32
    %c0_i32_27 = arith.constant 0 : i32
    %56 = arith.cmpi ne, %55, %c0_i32_27 : i32
    scf.if %56 {
      %c0_32 = arith.constant 0 : index
      %c0_33 = arith.constant 0 : index
      %63 = vector.load %arg8[%c0_32, %c0_33] : memref<8x128xf32, #tpu.memory_space<vmem>>, vector<8x128xf32>
      %64 = arith.addf %63, %19 : vector<8x128xf32>
      %c0_34 = arith.constant 0 : index
      %c0_35 = arith.constant 0 : index
      %65 = vector.load %arg8[%c0_34, %c0_35] : memref<8x128xf32, #tpu.memory_space<vmem>>, vector<8x128xf32>
      tpu.vector_store %arg8[%c0_34, %c0_35], %64 {strides = array<i32>} : memref<8x128xf32, #tpu.memory_space<vmem>>, vector<8x128xf32>,
      %c0_36 = arith.constant 0 : index
      %c0_37 = arith.constant 0 : index
      %66 = vector.load %arg9[%c0_36, %c0_37] : memref<8x128xf32, #tpu.memory_space<vmem>>, vector<8x128xf32>
      %67 = arith.addf %66, %36 : vector<8x128xf32>
      %c0_38 = arith.constant 0 : index
      %c0_39 = arith.constant 0 : index
      %68 = vector.load %arg9[%c0_38, %c0_39] : memref<8x128xf32, #tpu.memory_space<vmem>>, vector<8x128xf32>
      tpu.vector_store %arg9[%c0_38, %c0_39], %67 {strides = array<i32>} : memref<8x128xf32, #tpu.memory_space<vmem>>, vector<8x128xf32>,
      %c0_40 = arith.constant 0 : index
      %c0_41 = arith.constant 0 : index
      %69 = vector.load %arg10[%c0_40, %c0_41] : memref<8x128xf32, #tpu.memory_space<vmem>>, vector<8x128xf32>
      %70 = arith.addf %69, %53 : vector<8x128xf32>
      %c0_42 = arith.constant 0 : index
      %c0_43 = arith.constant 0 : index
      %71 = vector.load %arg10[%c0_42, %c0_43] : memref<8x128xf32, #tpu.memory_space<vmem>>, vector<8x128xf32>
      tpu.vector_store %arg10[%c0_42, %c0_43], %70 {strides = array<i32>} : memref<8x128xf32, #tpu.memory_space<vmem>>, vector<8x128xf32>,
    } else {
    }
    %c2_i32_28 = arith.constant 2 : i32
    %57 = arith.cmpi eq, %arg0, %c2_i32_28 : i32
    %58 = arith.extui %57 : i1 to i32
    %c0_i32_29 = arith.constant 0 : i32
    %59 = arith.cmpi ne, %58, %c0_i32_29 : i32
    scf.if %59 {
      %63 = tpu.iota {dimensions = array<i32: 0>} : vector<8x128xi32>
      %c16_i32 = arith.constant 16 : i32
      %64 = vector.broadcast %c16_i32 : i32 to vector<8x128xi32>
      %65 = arith.addi %64, %63 : vector<8x128xi32>
      %c21_i32 = arith.constant 21 : i32
      %66 = vector.broadcast %c21_i32 : i32 to vector<8x128xi32>
      %67 = arith.cmpi slt, %65, %66 : vector<8x128xi32>
      %c0_32 = arith.constant 0 : index
      %c0_33 = arith.constant 0 : index
      %68 = vector.load %arg8[%c0_32, %c0_33] : memref<8x128xf32, #tpu.memory_space<vmem>>, vector<8x128xf32>
      %cst_34 = arith.constant 0.000000e+00 : f32
      %69 = vector.broadcast %cst_34 : f32 to vector<8x128xf32>
      %70 = arith.select %67, %19, %69 : vector<8x128xi1>, vector<8x128xf32>
      %71 = arith.addf %68, %70 : vector<8x128xf32>
      %c0_35 = arith.constant 0 : index
      %c0_36 = arith.constant 0 : index
      %72 = vector.load %arg8[%c0_35, %c0_36] : memref<8x128xf32, #tpu.memory_space<vmem>>, vector<8x128xf32>
      tpu.vector_store %arg8[%c0_35, %c0_36], %71 {strides = array<i32>} : memref<8x128xf32, #tpu.memory_space<vmem>>, vector<8x128xf32>,
      %c0_37 = arith.constant 0 : index
      %c0_38 = arith.constant 0 : index
      %73 = vector.load %arg9[%c0_37, %c0_38] : memref<8x128xf32, #tpu.memory_space<vmem>>, vector<8x128xf32>
      %cst_39 = arith.constant 0.000000e+00 : f32
      %74 = vector.broadcast %cst_39 : f32 to vector<8x128xf32>
      %75 = arith.select %67, %36, %74 : vector<8x128xi1>, vector<8x128xf32>
      %76 = arith.addf %73, %75 : vector<8x128xf32>
      %c0_40 = arith.constant 0 : index
      %c0_41 = arith.constant 0 : index
      %77 = vector.load %arg9[%c0_40, %c0_41] : memref<8x128xf32, #tpu.memory_space<vmem>>, vector<8x128xf32>
      tpu.vector_store %arg9[%c0_40, %c0_41], %76 {strides = array<i32>} : memref<8x128xf32, #tpu.memory_space<vmem>>, vector<8x128xf32>,
      %c0_42 = arith.constant 0 : index
      %c0_43 = arith.constant 0 : index
      %78 = vector.load %arg10[%c0_42, %c0_43] : memref<8x128xf32, #tpu.memory_space<vmem>>, vector<8x128xf32>
      %cst_44 = arith.constant 0.000000e+00 : f32
      %79 = vector.broadcast %cst_44 : f32 to vector<8x128xf32>
      %80 = arith.select %67, %53, %79 : vector<8x128xi1>, vector<8x128xf32>
      %81 = arith.addf %78, %80 : vector<8x128xf32>
      %c0_45 = arith.constant 0 : index
      %c0_46 = arith.constant 0 : index
      %82 = vector.load %arg10[%c0_45, %c0_46] : memref<8x128xf32, #tpu.memory_space<vmem>>, vector<8x128xf32>
      tpu.vector_store %arg10[%c0_45, %c0_46], %81 {strides = array<i32>} : memref<8x128xf32, #tpu.memory_space<vmem>>, vector<8x128xf32>,
    } else {
    }
    %c2_i32_30 = arith.constant 2 : i32
    %60 = arith.cmpi eq, %arg0, %c2_i32_30 : i32
    %61 = arith.extui %60 : i1 to i32
    %c0_i32_31 = arith.constant 0 : i32
    %62 = arith.cmpi ne, %61, %c0_i32_31 : i32
    scf.if %62 {
      %c0_32 = arith.constant 0 : index
      %c0_33 = arith.constant 0 : index
      %63 = vector.load %arg8[%c0_32, %c0_33] : memref<8x128xf32, #tpu.memory_space<vmem>>, vector<8x128xf32>
      %cst_34 = arith.constant dense<0.000000e+00> : vector<128xf32>
      %64 = vector.multi_reduction <add>, %63, %cst_34 [0] : vector<8x128xf32> to vector<128xf32>
      %65 = vector.shape_cast %64 : vector<128xf32> to vector<1x128xf32>
      %c0_35 = arith.constant 0 : index
      %c0_36 = arith.constant 0 : index
      %66 = vector.load %arg5[%c0_35, %c0_36] : memref<1x128xf32, #tpu.memory_space<vmem>>, vector<1x128xf32>
      tpu.vector_store %arg5[%c0_35, %c0_36], %65 {strides = array<i32>} : memref<1x128xf32, #tpu.memory_space<vmem>>, vector<1x128xf32>,
      %c0_37 = arith.constant 0 : index
      %c0_38 = arith.constant 0 : index
      %67 = vector.load %arg9[%c0_37, %c0_38] : memref<8x128xf32, #tpu.memory_space<vmem>>, vector<8x128xf32>
      %cst_39 = arith.constant dense<0.000000e+00> : vector<128xf32>
      %68 = vector.multi_reduction <add>, %67, %cst_39 [0] : vector<8x128xf32> to vector<128xf32>
      %69 = vector.shape_cast %68 : vector<128xf32> to vector<1x128xf32>
      %c0_40 = arith.constant 0 : index
      %c0_41 = arith.constant 0 : index
      %70 = vector.load %arg6[%c0_40, %c0_41] : memref<1x128xf32, #tpu.memory_space<vmem>>, vector<1x128xf32>
      tpu.vector_store %arg6[%c0_40, %c0_41], %69 {strides = array<i32>} : memref<1x128xf32, #tpu.memory_space<vmem>>, vector<1x128xf32>,
      %c0_42 = arith.constant 0 : index
      %c0_43 = arith.constant 0 : index
      %71 = vector.load %arg10[%c0_42, %c0_43] : memref<8x128xf32, #tpu.memory_space<vmem>>, vector<8x128xf32>
      %cst_44 = arith.constant dense<0.000000e+00> : vector<128xf32>
      %72 = vector.multi_reduction <add>, %71, %cst_44 [0] : vector<8x128xf32> to vector<128xf32>
      %73 = vector.shape_cast %72 : vector<128xf32> to vector<1x128xf32>
      %c0_45 = arith.constant 0 : index
      %c0_46 = arith.constant 0 : index
      %74 = vector.load %arg7[%c0_45, %c0_46] : memref<1x128xf32, #tpu.memory_space<vmem>>, vector<1x128xf32>
      tpu.vector_store %arg7[%c0_45, %c0_46], %73 {strides = array<i32>} : memref<1x128xf32, #tpu.memory_space<vmem>>, vector<1x128xf32>,
    } else {
    }
    return
  }
  func.func @transform_0(%arg0: i32) -> (i32, i32, i32) {
    %c0_i32 = arith.constant 0 : i32
    %c0_i32_0 = arith.constant 0 : i32
    %c0_i32_1 = arith.constant 0 : i32
    return %c0_i32, %arg0, %c0_i32_0 : i32, i32, i32
  }
  func.func @transform_1(%arg0: i32) -> (i32, i32) {
    %c0_i32 = arith.constant 0 : i32
    %c0_i32_0 = arith.constant 0 : i32
    return %arg0, %c0_i32 : i32, i32
  }
  func.func @transform_2(%arg0: i32) -> (i32, i32) {
    %c0_i32 = arith.constant 0 : i32
    %c0_i32_0 = arith.constant 0 : i32
    return %arg0, %c0_i32 : i32, i32
  }
  func.func @transform_3(%arg0: i32) -> (i32, i32) {
    %c0_i32 = arith.constant 0 : i32
    %c0_i32_0 = arith.constant 0 : i32
    return %arg0, %c0_i32 : i32, i32
  }
  func.func @transform_4(%arg0: i32) -> (i32, i32) {
    %c0_i32 = arith.constant 0 : i32
    %c0_i32_0 = arith.constant 0 : i32
    %c0_i32_1 = arith.constant 0 : i32
    return %c0_i32, %c0_i32_0 : i32, i32
  }
  func.func @transform_5(%arg0: i32) -> (i32, i32) {
    %c0_i32 = arith.constant 0 : i32
    %c0_i32_0 = arith.constant 0 : i32
    %c0_i32_1 = arith.constant 0 : i32
    return %c0_i32, %c0_i32_0 : i32, i32
  }
  func.func @transform_6(%arg0: i32) -> (i32, i32) {
    %c0_i32 = arith.constant 0 : i32
    %c0_i32_0 = arith.constant 0 : i32
    %c0_i32_1 = arith.constant 0 : i32
    return %c0_i32, %c0_i32_0 : i32, i32
  }
}

</mosaic_0001>

<bundles_post_ra>
// kernel: tpu_custom_call.1
= control target key start
LH: loop header
LB: loop body
LE: loop exit
PB: predicated region body
PF: predicated region fallthrough
CT: control target
= control target key end

     0   :  { %s1322_s0 = inlined_call_operand.hbm [shape: f32[3,21,128], index: 0, kind: input, shape index: {}]   ;;  %s1323_s1 = inlined_call_operand.hbm [shape: f32[21,128], index: 1, kind: input, shape index: {}]   ;;  %s1324_s2 = inlined_call_operand.hbm [shape: f32[21,128], index: 2, kind: input, shape index: {}]   ;;  %s1325_s3 = inlined_call_operand.hbm [shape: f32[21,128], index: 3, kind: input, shape index: {}]   ;;  %s1326_s4 = inlined_call_operand.hbm [shape: f32[1,128], index: 4, kind: output, shape index: {0}]   ;;  %s1327_s5 = inlined_call_operand.hbm [shape: f32[1,128], index: 5, kind: output, shape index: {1}]   ;;  %s1328_s6 = inlined_call_operand.hbm [shape: f32[1,128], index: 6, kind: output, shape index: {2}]  }
   0x1   :  { %1333 = sst [smem:[#allocation24_spill]] %s1322_s0 }
   0x2   :  { %1334 = sst [smem:[#allocation25_spill]] %s1323_s1 }
   0x3   :  { %12 = vsyncpa [#allocation6], 0 }
   0x4   :  { %14 = vsyncpa [#allocation6 + $0x1], 0 }
   0x5   :  { %15 = vsyncpa [#allocation9], 0 }
   0x6   :  { %17 = vsyncpa [#allocation9 + $0x1], 0 }
   0x7   :  { %18 = vsyncpa [#allocation12], 0 }
   0x8   :  { %20 = vsyncpa [#allocation12 + $0x1], 0 }
   0x9   :  { %21 = vsyncpa [#allocation7], 0 }
   0xa   :  { %22 = vsyncpa [#allocation15], 0  ;;  %s1032_s21 = smov 0   ;;  %s1034_s22 = smov 0  }
   0xb   :  { %s1036_s23 = smov 0   ;;  %s1038_s24 = smov 0  }
   0xc LB: > { %1335 = sst [smem:[#allocation22_spill]] %s980_s23  ;;  %s1051_s25 = sadd.s32 4294967295, %s984_s24   ;;  %s984_s24 = sphi %s1038_s24, %s1353_s24   ;;  %s980_s23 = sphi %s1036_s23, %s1350_s23   ;;  %s976_s22 = sphi %s1034_s22, %s1352_s22   ;;  %s972_s21 = sphi %s1032_s21, %s1351_s21  }
   0xd   : > { %s1054_s26 = sadd.s32 1, %s984_s24   ;;  %s35_s28 = sadd.s32 1, %s980_s23 }
   0xe   : > { %s32_s27 = ssub.s32 %s984_s24, %s1054_s26  ;;  %p42_p1 = scmp.ne.s32.totalorder %s980_s23, %s976_s22 }
   0xf   : > { %p33_p0 = scmp.eq.s32.totalorder %s32_s27, 0  ;;  %p43_p2 = scmp.eq.s32.totalorder %s984_s24, 0 }
  0x10   : > { %p48_p3 = scmp.ne.s32.totalorder %s976_s22, %s972_s21  ;;  %p49_p5 = scmp.eq.s32.totalorder %s1051_s25, 0 }
  0x11   : > { %s1064_s29 = scalar_select %p33_p0, %s980_s23, %s35_s28  }
  0x12   : > { %p44_p4 = por %p43_p2, %p42_p1  ;;  %p690_p6 = scmp.lt.s32.totalorder %s984_s24, 3 }
  0x13   : > { %1336 = sst [smem:[#allocation23_spill]] %s1064_s29  ;;  %p1068_p7 = por %p49_p5, %p48_p3 }
  0x14   : > { %s1073_s7 = sand.u32 1, %s980_s23   ;;  %s1076_s8 = sshll.u32 %s984_s24, 7 }
  0x15   : > { %s1337_s30 = scalar_select %p1068_p7, 1, 0 }
  0x16   : > { %p1078_p8 = pnand %p690_p6, %p44_p4  ;;  %s1339_s0 = sld [smem:[#allocation24_spill]] }
  0x17   : > { %s233_s13 = sand.u32 1, %s984_s24   ;;  %s1090_s14 = sshll.u32 %s1073_s7, 3 }
  0x18   : > { %s1338_s9 = scalar_select %p1078_p8, 1, 0 }
  0x19   : > { %s1340_s1 = sld [smem:[#allocation25_spill]]  ;;  %s237_s18 = scalar_lea.vmem [#allocation8], %s1090_s14 }
  0x1a   : > { %s244_s19 = sshll.u32 %s237_s18, 4  ;;  %s1103_s20 = scalar_lea.sflag [#allocation9], %s233_s13  ;;  %s1101_s19 = int_to_ptr.vmem [resolvable:$true] %s244_s19 }
  0x1b   : > { %p1109_p12 = pneg %p1078_p8 }
  0x1c   : > { %s1086_s12 = scalar_lea.hbm %s1339_s0, %s1076_s8 }
  0x1f   : > { %s1096_s17 = scalar_lea.hbm %s1340_s1, %s1076_s8  ;;  %s741_s11 = scalar_lea.hbm %s1340_s1, 384 }
  0x20   : > { %s736_s21 = scalar_lea.hbm %s1096_s17, 128  ;;  %p742_p1 = scmp.lt.u32.totalorder %s1096_s17, %s1340_s1 }
  0x21   : > { %p737_p11 = scmp.ne.s32.totalorder %s1096_s17, %s736_s21  ;;  %p743_p2 = scmp.lt.u32.totalorder %s741_s11, %s736_s21 }
  0x22   : > { %p745_p4 = scmp.lt.u32.totalorder %s736_s21, %s1096_s17 }
  0x23   : > { %p739_p13 = pnand %p1109_p12, %p737_p11  ;;  %p744_p3 = por %p743_p2, %p742_p1 }
  0x25   : > { %p740_p0 = pneg %p739_p13  ;;  %p746_p5 = por %p745_p4, %p744_p3 }
  0x27   : > { %p747_p6 = pnand %p746_p5, %p740_p0 }
  0x29   : > { %750 = shalt.err (!%p747_p6)
}
  0x2a   : > { %s751_s13 = scalar_lea.vmem %s1101_s19, 128  ;;  %s986_s18 = smov [#allocation8]  }
  0x2b   : > { %p752_p11 = scmp.ne.s32.totalorder %s1101_s19, %s751_s13  ;;  %s756_s28 = sshll.u32 %s986_s18, 4  ;;  %s757_s28 = int_to_ptr.vmem [resolvable:$false] %s756_s28 }
  0x2c   : > { %s758_s10 = scalar_lea.vmem %s757_s28, 256  ;;  %p759_p10 = scmp.lt.s32.totalorder %s1101_s19, %s757_s28 }
  0x2d   : > { %p754_p13 = pnand %p752_p11, %p1109_p12  ;;  %p760_p7 = scmp.lt.s32.totalorder %s758_s10, %s751_s13 }
  0x2f   : > { %p755_p9 = pneg %p754_p13  ;;  %p761_p1 = por %p760_p7, %p759_p10 }
  0x31   : > { %p762_p2 = pnand %p761_p1, %p755_p9 }
  0x33   : > { %765 = shalt.err (!%p762_p2)
}
  0x34   : > { %683 = dma.hbm_to_vmem [thread:$0]  (!%p1078_p8), %s1096_s17, 128, %s1101_s19, %s1103_s20  }
  0x35   : > { %p1342_p0 = scmp.lt.s32.totalorder %s984_s24, 4  ;;  %p1343_p3 = scmp.ge.s32.totalorder %s984_s24, 1 }
  0x36   : > { %s655_s11 = smul.u32 24, %s1073_s7  ;;  %s1148_s28 = scalar_lea.hbm %s1324_s2, %s1076_s8 }
  0x37   : > { %p1137_p7 = pnand %p1343_p3, %p1342_p0  ;;  %s214_s10 = scalar_lea.sflag [#allocation6], %s1073_s7 }
  0x38   : > { %s217_s15 = scalar_lea.vmem [#allocation5], %s655_s11  ;;  %s766_s1 = scalar_lea.hbm %s1086_s12, 384 }
  0x39   : > { %s1344_s21 = scalar_select %p1137_p7, 1, 0 }
  0x3a   : > { %s223_s16 = sshll.u32 %s217_s15, 4  ;;  %p767_p9 = scmp.ne.s32.totalorder %s1086_s12, %s766_s1  ;;  %s1142_s16 = int_to_ptr.vmem [resolvable:$true] %s223_s16 }
  0x3b   : > { %s771_s19 = scalar_lea.hbm %s1339_s0, 1152  ;;  %p772_p5 = scmp.lt.u32.totalorder %s1086_s12, %s1339_s0 }
  0x3c   : > { %p769_p10 = pnand %p767_p9, %p1109_p12  ;;  %p773_p6 = scmp.lt.u32.totalorder %s771_s19, %s766_s1 }
  0x3d   : > { %p775_p13 = scmp.lt.u32.totalorder %s766_s1, %s1086_s12 }
  0x3e   : > { %p770_p4 = pneg %p769_p10  ;;  %p774_p11 = por %p773_p6, %p772_p5 }
  0x40   : > { %p776_p1 = por %p775_p13, %p774_p11 }
  0x42   : > { %p777_p2 = pnand %p776_p1, %p770_p4 }
  0x44   : > { %780 = shalt.err (!%p777_p2)
}
  0x45   : > { %s781_s15 = scalar_lea.vmem %s1142_s16, 384  ;;  %s987_s13 = smov [#allocation5]  }
  0x46   : > { %p782_p0 = scmp.ne.s32.totalorder %s1142_s16, %s781_s15  ;;  %s786_s18 = sshll.u32 %s987_s13, 4  ;;  %s787_s18 = int_to_ptr.vmem [resolvable:$false] %s786_s18 }
  0x47   : > { %s788_s29 = scalar_lea.vmem %s787_s18, 768  ;;  %p789_p10 = scmp.lt.s32.totalorder %s1142_s16, %s787_s18 }
  0x48   : > { %p784_p3 = pnand %p782_p0, %p1109_p12  ;;  %p790_p7 = scmp.lt.s32.totalorder %s788_s29, %s781_s15 }
  0x4a   : > { %p785_p9 = pneg %p784_p3  ;;  %p791_p5 = por %p790_p7, %p789_p10 }
  0x4c   : > { %p792_p6 = pnand %p791_p5, %p785_p9 }
  0x4e   : > { %795 = shalt.err (!%p792_p6)
}
  0x4f   : > { %s988_s1 = smov 384   ;;  %s989_s24 = smov 128  }
  0x50   : > { %s990_s17 = smov 8   ;;  %s255_s19 = scalar_lea.vmem [#allocation10], %s1090_s14 }
  0x51   : > { %680 = dma.hbm_to_vmem [thread:$0]  (!%p1078_p8), %s1086_s12, 384, %s1142_s16, %s214_s10, %s988_s1, %s989_s24, %s990_s17  }
  0x52   : > { %s262_s11 = sshll.u32 %s255_s19, 4  ;;  %s796_s15 = scalar_lea.hbm %s1148_s28, 128  ;;  %s263_s11 = int_to_ptr.vmem [resolvable:$true] %s262_s11 }
  0x53   : > { %p797_p7 = scmp.ne.s32.totalorder %s1148_s28, %s796_s15  ;;  %s801_s29 = scalar_lea.hbm %s1324_s2, 384 }
  0x54   : > { %p802_p13 = scmp.lt.u32.totalorder %s1148_s28, %s1324_s2  ;;  %p803_p1 = scmp.lt.u32.totalorder %s801_s29, %s796_s15 }
  0x55   : > { %p799_p4 = pnand %p797_p7, %p1109_p12  ;;  %p805_p0 = scmp.lt.u32.totalorder %s796_s15, %s1148_s28 }
  0x56   : > { %p804_p2 = por %p803_p1, %p802_p13 }
  0x57   : > { %p800_p11 = pneg %p799_p4 }
  0x58   : > { %p806_p3 = por %p805_p0, %p804_p2 }
  0x5a   : > { %p807_p9 = pnand %p806_p3, %p800_p11 }
  0x5c   : > { %810 = shalt.err (!%p807_p9)
}
  0x5d   : > { %s811_s12 = scalar_lea.vmem %s263_s11, 128  ;;  %s991_s16 = smov [#allocation10]  }
  0x5e   : > { %p812_p10 = scmp.ne.s32.totalorder %s263_s11, %s811_s12  ;;  %s816_s10 = sshll.u32 %s991_s16, 4  ;;  %s817_s10 = int_to_ptr.vmem [resolvable:$false] %s816_s10 }
  0x5f   : > { %s818_s1 = scalar_lea.vmem %s817_s10, 256  ;;  %p819_p7 = scmp.lt.s32.totalorder %s263_s11, %s817_s10 }
  0x60   : > { %p814_p5 = pnand %p812_p10, %p1109_p12  ;;  %p820_p4 = scmp.lt.s32.totalorder %s818_s1, %s811_s12 }
  0x62   : > { %p815_p6 = pneg %p814_p5  ;;  %p821_p8 = por %p820_p4, %p819_p7 }
  0x64   : > { %p822_p1 = pnand %p821_p8, %p815_p6 }
  0x66   : > { %825 = shalt.err (!%p822_p1)
}
  0x67   : > { %p1345_p13 = scmp.ne.s32.totalorder %s1338_s9, 0  ;;  %s1197_s24 = scalar_lea.hbm %s1325_s3, %s1076_s8 }
  0x68   : > { %s273_s17 = scalar_lea.vmem [#allocation11], %s1090_s14  ;;  %s270_s15 = scalar_lea.sflag [#allocation12], %s1073_s7 }
  0x69   : > { %686 = dma.hbm_to_vmem [thread:$0]  (!%p1345_p13), %s1148_s28, 128, %s263_s11, %s1103_s20  }
  0x6a   : > { %s280_s19 = sshll.u32 %s273_s17, 4  ;;  %s826_s13 = scalar_lea.hbm %s1197_s24, 128  ;;  %s281_s19 = int_to_ptr.vmem [resolvable:$true] %s280_s19 }
  0x6b   : > { %p827_p8 = scmp.ne.s32.totalorder %s1197_s24, %s826_s13  ;;  %s831_s28 = scalar_lea.hbm %s1325_s3, 384 }
  0x6c   : > { %p832_p0 = scmp.lt.u32.totalorder %s1197_s24, %s1325_s3  ;;  %p833_p3 = scmp.lt.u32.totalorder %s831_s28, %s826_s13 }
  0x6d   : > { %p829_p11 = pnand %p827_p8, %p1109_p12  ;;  %p835_p10 = scmp.lt.u32.totalorder %s826_s13, %s1197_s24 }
  0x6e   : > { %p834_p9 = por %p833_p3, %p832_p0 }
  0x6f   : > { %p830_p2 = pneg %p829_p11 }
  0x70   : > { %p836_p5 = por %p835_p10, %p834_p9 }
  0x72   : > { %p837_p6 = pnand %p836_p5, %p830_p2 }
  0x74   : > { %840 = shalt.err (!%p837_p6)
}
  0x75   : > { %s841_s7 = scalar_lea.vmem %s281_s19, 128  ;;  %s992_s14 = smov [#allocation11]  }
  0x76   : > { %p842_p7 = scmp.ne.s32.totalorder %s281_s19, %s841_s7  ;;  %s846_s29 = sshll.u32 %s992_s14, 4  ;;  %s847_s29 = int_to_ptr.vmem [resolvable:$false] %s846_s29 }
  0x77   : > { %s848_s12 = scalar_lea.vmem %s847_s29, 256  ;;  %p849_p8 = scmp.lt.s32.totalorder %s281_s19, %s847_s29 }
  0x78   : > { %p844_p4 = pnand %p842_p7, %p1109_p12  ;;  %p850_p11 = scmp.lt.s32.totalorder %s848_s12, %s841_s7 }
  0x7a   : > { %p845_p1 = pneg %p844_p4  ;;  %p851_p13 = por %p850_p11, %p849_p8 }
  0x7c   : > { %p852_p0 = pnand %p851_p13, %p845_p1 }
  0x7e   : > { %855 = shalt.err (!%p852_p0)
}
  0x7f   : > { %p1346_p3 = scmp.ne.s32.totalorder %s1338_s9, 0  ;;  %p1347_p2 = scmp.ne.s32.totalorder %s1344_s21, 0 }
  0x80   : > { %s291_s27 = sand.u32 (!%p1347_p2), 1, %s976_s22   ;;  %p1348_p12 = scmp.ne.s32.totalorder (!%p1347_p2), %s1337_s30, 0 }
  0x81   : > { %689 = dma.hbm_to_vmem [thread:$0]  (!%p1346_p3), %s1197_s24, 128, %s281_s19, %s270_s15  }
  0x82   : > { %289 = sbr.rel (%p1347_p2) target bundleno = 266 (0x10a), region = 36  ;;  %s292_s10 = scalar_lea.sflag (!%p1347_p2), [#allocation6], %s291_s27 }
  0x83   : > { %s656_s16 = smul.u32 (!%p1347_p2), 24, %s291_s27 }
  0x85   : > { %s295_s1 = scalar_lea.vmem (!%p1347_p2), [#allocation5], %s656_s16 }
  0x89   : > { %951 = dma.done.wait (%p1348_p12), %s292_s10, 384  }
  0x8a   : > { %953 = vsyncadd (%p1348_p12), %s292_s10, 4294966912  ;;  %s300_s0 = sand.u32 1, %s1051_s25   ;;  %s635_s9 = sshll.u32 %s291_s27, 3 }
  0x8b   : > { %s301_s23 = scalar_lea.sflag [#allocation9], %s300_s0  ;;  %s304_s24 = scalar_lea.vmem [#allocation8], %s635_s9 }
  0x8c   : > { %955 = dma.done.wait (%p1348_p12), %s301_s23, 256  }
  0x8d   : > { %957 = vsyncadd (%p1348_p12), %s301_s23, 4294967040  ;;  %s313_s21 = scalar_lea.vmem [#allocation10], %s635_s9  ;;  %s319_s17 = scalar_lea.sflag [#allocation12], %s291_s27 }
  0x8e   : > { %s322_s19 = scalar_lea.vmem [#allocation11], %s635_s9 }
  0x8f   : > { %959 = dma.done.wait (%p1348_p12), %s319_s17, 128  }
  0x90   : > { %961 = vsyncadd (%p1348_p12), %s319_s17, 4294967168  ;;  %p638_p13 = scmp.ne.s32.totalorder %s1051_s25, 0 }
  0x91   : > { %v993_v0 = vmov (!%p638_p13), 0.0  }
  0x92   : > { %364 = sbr.rel (%p638_p13) target bundleno = 153 (0x99), region = 56  ;;  %365 = vst [vmem:[#allocation2] sm:$0xff] (!%p638_p13), %v993_v0  ;;  %366 = vst [vmem:[#allocation3] sm:$0xff] (!%p638_p13), %v993_v0 }
  0x93   : > { %367 = vst [vmem:[#allocation4] sm:$0xff] (!%p638_p13), %v993_v0 }
  0x99 PF: > { %v368_v1 = vld [vmem:[%s295_s1] sm:$0xff]  ;;  %v640_v4 = vld [vmem:[%s295_s1 + $0x8] sm:$0xff]  ;;  %v642_v10 = vld [vmem:[%s295_s1 + $0x10] sm:$0xff]  ;;  %p645_p9 = scmp.eq.s32.totalorder %s1051_s25, 2 }
  0x9a   : > { %v369_v2 = vld [vmem:[%s304_s24] sm:$0xff]  ;;  %v380_v5 = vld [vmem:[%s313_s21] sm:$0xff] }
  0x9b   : > { %v370_v3 = vmul.f32 0.0050251256, %v369_v2  ;;  %v391_v6 = vld [vmem:[%s322_s19] sm:$0xff]  ;;  %v381_v7 = vmul.f32 0.0050251256, %v380_v5  ;;  %v405_v29 = vld [vmem:[#allocation2] sm:$0xff] (!%p645_p9) }
  0x9c   : > { %v643_v8 = vadd.f32 -10.0, %v391_v6  ;;  %v408_v30 = vld [vmem:[#allocation3] sm:$0xff] (!%p645_p9)  ;;  %v411_v31 = vld [vmem:[#allocation4] sm:$0xff] (!%p645_p9) }
  0x9d   : > { %v371_v9 = vsub.f32 %v368_v1, %v370_v3  ;;  %v382_v11 = vsub.f32 %v640_v4, %v381_v7 }
  0x9e   : > { %v393_v12 = vmul.f32 0.025641026, %v643_v8 }
  0x9f   : > { %v372_v13 = vand.u32 2147483647, %v371_v9  ;;  %v374_v14 = vmul.f32 0.5, %v371_v9  ;;  %v383_v15 = vand.u32 2147483647, %v382_v11  ;;  %v385_v16 = vmul.f32 0.5, %v382_v11 }
  0xa0   : > { %v394_v17 = vsub.f32 %v642_v10, %v393_v12  ;;  %404 = sbr.rel (%p645_p9) target bundleno = 170 (0xaa), region = 60 }
  0xa1   : > { %vm373_vm0 = vcmp.lt.f32.partialorder %v372_v13, 1.0  ;;  %v375_v18 = vmul.f32 %v374_v14, %v371_v9  ;;  %v639_v19 = vadd.f32 -0.5, %v372_v13  ;;  %vm384_vm1 = vcmp.lt.f32.partialorder %v383_v15, 1.0 }
  0xa2   : > { %v386_v20 = vmul.f32 %v385_v16, %v382_v11  ;;  %v641_v21 = vadd.f32 -0.5, %v383_v15  ;;  %v395_v22 = vand.u32 2147483647, %v394_v17  ;;  %v397_v24 = vmul.f32 0.5, %v394_v17 }
  0xa3   : > { %v377_v23 = vsel %vm373_vm0, %v375_v18, %v639_v19 }
  0xa4   : > { %v388_v25 = vsel %vm384_vm1, %v386_v20, %v641_v21  ;;  %vm396_vm2 = vcmp.lt.f32.partialorder %v395_v22, 1.0  ;;  %v644_v26 = vadd.f32 -0.5, %v395_v22  ;;  %v398_v27 = vmul.f32 %v397_v24, %v394_v17 }
  0xa5   : > { %v406_v32 = vadd.f32 (!%p645_p9), %v405_v29, %v377_v23  ;;  %v409_v33 = vadd.f32 (!%p645_p9), %v408_v30, %v388_v25 }
  0xa6   : > { %v400_v28 = vsel %vm396_vm2, %v398_v27, %v644_v26 }
  0xa7   : > { %v412_v34 = vadd.f32 %v411_v31, %v400_v28  ;;  %407 = vst [vmem:[#allocation2] sm:$0xff] %v406_v32  ;;  %410 = vst [vmem:[#allocation3] sm:$0xff] %v409_v33 }
  0xa9   : > { %413 = vst [vmem:[#allocation4] sm:$0xff] %v412_v34 }
  0xaa PF: > { %p646_p10 = scmp.ne.s32.totalorder %s1051_s25, 2 }
  0xab   : > { %v418_v35 = vlaneseq (!%p646_p10) }
  0xac   : > { %417 = sbr.rel (%p646_p10) target bundleno = 195 (0xc3), region = 64 }
  0xad   : > { %v419_v36 = vshrl.u32 (!%p646_p10), %v418_v35, 7 }
  0xaf   : > { %v420_v37 = vadd.s32 (!%p646_p10), 16, %v419_v36 }
  0xb0   : > { %v430_v40 = vld [vmem:[#allocation4] sm:$0xff] (!%p646_p10) }
  0xb1   : > { %v422_v38 = vld [vmem:[#allocation2] sm:$0xff] (!%p646_p10)  ;;  %v426_v39 = vld [vmem:[#allocation3] sm:$0xff] (!%p646_p10)  ;;  %vm421_vm3 = vcmp.lt.s32.totalorder (!%p646_p10), %v420_v37, 21 }
  0xb2   : > { %v423_v41 = vsel (!%p646_p10), %vm421_vm3, %v377_v23, 0.0  ;;  %v427_v42 = vsel (!%p646_p10), %vm421_vm3, %v388_v25, 0.0  ;;  %v431_v43 = vsel (!%p646_p10), %vm421_vm3, %v400_v28, 0.0 }
  0xb3   : > { %v424_v44 = vadd.f32 %v423_v41, %v422_v38  ;;  %v428_v45 = vadd.f32 %v427_v42, %v426_v39  ;;  %v432_v46 = vadd.f32 %v431_v43, %v430_v40 }
  0xb5   : > { %425 = vst [vmem:[#allocation2] sm:$0xff] %v424_v44  ;;  %429 = vst [vmem:[#allocation3] sm:$0xff] %v428_v45  ;;  %v435_v47 = vrot.slane %v424_v44, 4  ;;  %v443_v48 = vrot.slane %v428_v45, 4  ;;  %v451_v49 = vrot.slane %v432_v46, 4 }
  0xb6   : > { %433 = vst [vmem:[#allocation4] sm:$0xff] %v432_v46 }
  0xb7   : > { %v436_v50 = vadd.f32 %v435_v47, %v424_v44  ;;  %v444_v51 = vadd.f32 %v443_v48, %v428_v45  ;;  %v452_v52 = vadd.f32 %v451_v49, %v432_v46 }
  0xb9   : > { %v437_v53 = vrot.slane %v436_v50, 2  ;;  %v445_v54 = vrot.slane %v444_v51, 2  ;;  %v453_v55 = vrot.slane %v452_v52, 2 }
  0xbb   : > { %v438_v56 = vadd.f32 %v437_v53, %v436_v50  ;;  %v446_v57 = vadd.f32 %v445_v54, %v444_v51  ;;  %v454_v58 = vadd.f32 %v453_v55, %v452_v52 }
  0xbd   : > { %v439_v59 = vrot.slane %v438_v56, 1  ;;  %v447_v60 = vrot.slane %v446_v57, 1  ;;  %v455_v61 = vrot.slane %v454_v58, 1 }
  0xbf   : > { %v440_v62 = vadd.f32 %v439_v59, %v438_v56  ;;  %v448_v63 = vadd.f32 %v447_v60, %v446_v57  ;;  %v456_v0 = vadd.f32 %v455_v61, %v454_v58 }
  0xc1   : > { %441 = vst [vmem:[#allocation13] sm:$0x1] %v440_v62  ;;  %449 = vst [vmem:[#allocation14] sm:$0x1] %v448_v63 }
  0xc2   : > { %457 = vst [vmem:[#allocation16] sm:$0x1] %v456_v0 }
  0xc3 PF: > { %s994_s30 = smov [#allocation14]   ;;  %s995_s13 = smov [#allocation13]  }
  0xc4   : > { %s476_s15 = sshll.u32 %s994_s30, 4  ;;  %s465_s18 = sshll.u32 %s995_s13, 4  ;;  %s477_s15 = int_to_ptr.vmem [resolvable:$true] %s476_s15  ;;  %s1239_s18 = int_to_ptr.vmem [resolvable:$true] %s465_s18 }
  0xc5   : > { %s856_s20 = scalar_lea.vmem %s477_s15, 16  ;;  %s862_s28 = scalar_lea.vmem %s477_s15, 32 }
  0xc6   : > { %p857_p5 = scmp.ne.s32.totalorder %s477_s15, %s856_s20  ;;  %p863_p4 = scmp.lt.s32.totalorder %s477_s15, %s477_s15 }
  0xc7   : > { %p864_p1 = scmp.lt.s32.totalorder %s862_s28, %s856_s20 }
  0xc8   : > { %p858_p6 = pnand %p857_p5, %p645_p9 }
  0xc9   : > { %p865_p8 = por %p864_p1, %p863_p4 }
  0xca   : > { %p859_p7 = pneg %p858_p6 }
  0xcc   : > { %p866_p11 = pnand %p865_p8, %p859_p7 }
  0xce   : > { %869 = shalt.err (!%p866_p11)
}
  0xcf   : > { %s870_s7 = scalar_lea.hbm %s1327_s5, 16 }
  0xd0   : > { %p871_p0 = scmp.ne.s32.totalorder %s1327_s5, %s870_s7  ;;  %p876_p12 = scmp.lt.u32.totalorder %s870_s7, %s1327_s5 }
  0xd2   : > { %p872_p3 = pnand %p871_p0, %p645_p9 }
  0xd4   : > { %p873_p2 = pneg %p872_p3 }
  0xd6   : > { %p878_p13 = pnand %p876_p12, %p873_p2 }
  0xd8   : > { %881 = shalt.err (!%p878_p13)
}
  0xd9   : > { %668 = dma.vmem_to_hbm [thread:$0]  (%p645_p9), %s477_s15, 16, %s1327_s5, [#allocation15]  }
  0xda   : > { %s882_s1 = scalar_lea.vmem %s1239_s18, 16  ;;  %s888_s0 = scalar_lea.vmem %s1239_s18, 32 }
  0xdb   : > { %p883_p10 = scmp.ne.s32.totalorder %s1239_s18, %s882_s1  ;;  %p889_p7 = scmp.lt.s32.totalorder %s1239_s18, %s1239_s18 }
  0xdc   : > { %p890_p4 = scmp.lt.s32.totalorder %s888_s0, %s882_s1 }
  0xdd   : > { %p884_p5 = pnand %p883_p10, %p645_p9 }
  0xde   : > { %p891_p1 = por %p890_p4, %p889_p7 }
  0xdf   : > { %p885_p6 = pneg %p884_p5 }
  0xe1   : > { %p892_p8 = pnand %p891_p1, %p885_p6 }
  0xe3   : > { %895 = shalt.err (!%p892_p8)
}
  0xe4   : > { %s896_s24 = scalar_lea.hbm %s1326_s4, 16 }
  0xe5   : > { %p897_p11 = scmp.ne.s32.totalorder %s1326_s4, %s896_s24  ;;  %p902_p2 = scmp.lt.u32.totalorder %s896_s24, %s1326_s4 }
  0xe7   : > { %p898_p0 = pnand %p897_p11, %p645_p9 }
  0xe9   : > { %p899_p3 = pneg %p898_p0 }
  0xeb   : > { %p904_p12 = pnand %p902_p2, %p899_p3 }
  0xed   : > { %907 = shalt.err (!%p904_p12)
}
  0xee   : > { %666 = dma.vmem_to_hbm [thread:$0]  (%p645_p9), %s1239_s18, 16, %s1326_s4, [#allocation7]  }
  0xef   : > { %s996_s20 = smov [#allocation16]  }
  0xf0   : > { %s487_s28 = sshll.u32 %s996_s20, 4  ;;  %s488_s28 = int_to_ptr.vmem [resolvable:$true] %s487_s28 }
  0xf1   : > { %s908_s11 = scalar_lea.vmem %s488_s28, 16  ;;  %s914_s8 = scalar_lea.vmem %s488_s28, 32 }
  0xf2   : > { %p909_p13 = scmp.ne.s32.totalorder %s488_s28, %s908_s11  ;;  %p915_p6 = scmp.lt.s32.totalorder %s488_s28, %s488_s28 }
  0xf3   : > { %p916_p7 = scmp.lt.s32.totalorder %s914_s8, %s908_s11 }
  0xf4   : > { %p910_p10 = pnand %p909_p13, %p645_p9 }
  0xf5   : > { %p917_p4 = por %p916_p7, %p915_p6 }
  0xf6   : > { %p911_p5 = pneg %p910_p10 }
  0xf8   : > { %p918_p1 = pnand %p917_p4, %p911_p5 }
  0xfa   : > { %921 = shalt.err (!%p918_p1)
}
  0xfb   : > { %s922_s29 = scalar_lea.hbm %s1328_s6, 16 }
  0xfc   : > { %p923_p8 = scmp.ne.s32.totalorder %s1328_s6, %s922_s29  ;;  %p928_p3 = scmp.lt.u32.totalorder %s922_s29, %s1328_s6 }
  0xfe   : > { %p924_p11 = pnand %p923_p8, %p645_p9 }
 0x100   : > { %p925_p0 = pneg %p924_p11 }
 0x102   : > { %p930_p2 = pnand %p928_p3, %p925_p0 }
 0x104   : > { %933 = shalt.err (!%p930_p2)
}
 0x105   : > { %670 = dma.vmem_to_hbm [thread:$0]  (%p645_p9), %s488_s28, 16, %s1328_s6, [#allocation15]  }
 0x106   : > { %963 = dma.done.wait (%p645_p9), [#allocation7], 16  }
 0x107   : > { %965 = vsyncadd (%p645_p9), [#allocation7], 4294967280 }
 0x108   : > { %967 = dma.done.wait (%p645_p9), [#allocation15], 32  }
 0x109   : > { %969 = vsyncadd (%p645_p9), [#allocation15], 4294967264 }
 0x10a PF: > { %s1349_s0 = sld [smem:[#allocation22_spill]]  ;;  %s1350_s23 = sld [smem:[#allocation23_spill]] }
 0x10b   : > { %p25_p12 = scmp.ge.s32.totalorder %s1054_s26, 5   ;;  %s1351_s21 = smov %s976_s22 }
 0x10c   : > { %s1353_s24 = smov %s1054_s26 }
 0x10d   :  { %27 = sbr.rel (!%p25_p12) target bundleno = 12 (0xc), region = 140 }
 0x110   : > { %s1352_s22 = smov %s1349_s0 }
 0x114   :  { %508 = vsyncpa [#allocation6], 1 }
 0x115   :  { %510 = vsyncpa [#allocation6 + $0x1], 1 }
 0x116   :  { %511 = vsyncpa [#allocation9], 1 }
 0x117   :  { %513 = vsyncpa [#allocation9 + $0x1], 1 }
 0x118   :  { %514 = vsyncpa [#allocation12], 1 }
 0x119   :  { %516 = vsyncpa [#allocation12 + $0x1], 1 }
 0x11a   :  { %517 = vsyncpa [#allocation7], 1 }
 0x11b   :  { %519 = vsyncpa [#allocation7 + $0x1], 1 }
 0x11c   :  { %520 = vsyncpa [#allocation15], 1 }

</bundles_post_ra>
